<compile_context>
chip_gen: v7x
topology: tpu7x:2x2x1
jax: 0.10.0
libtpu: 0.0.40
codegen_flags: <defaults>
</compile_context>

<pallas_src>
import jax
import jax.numpy as jnp
from jax import lax
from jax.experimental import pallas as pl
from jax.experimental.pallas import tpu as pltpu

LANE = 128   # vreg lane width
SUB = 8      # vreg sublane count


def _make_kernel(tile_rows, steps_per_core, rows, need_mask):
    r = tile_rows // SUB

    def kernel(pred_ref, gt_ref, loss_ref, npos_ref):
        step = pl.program_id(1)

        @pl.when(step == 0)
        def _():
            loss_ref[...] = jnp.zeros_like(loss_ref)
            npos_ref[...] = jnp.zeros_like(npos_ref)

        pred = pred_ref[...].astype(jnp.float32)
        gt = gt_ref[...].astype(jnp.float32)

        if need_mask:
            # Logical (unclamped) first row of this tile. Rows at/after `rows`
            # are garbage (partial last block) or duplicates (clamped block
            # index); force them to neutral values so they contribute 0 and
            # can never inject NaNs.
            blk = pl.program_id(0) * steps_per_core + step
            valid_rows = rows - blk * tile_rows
            row_idx = lax.broadcasted_iota(jnp.int32, (tile_rows, LANE), 0)
            valid = row_idx < valid_rows
            pred = jnp.where(valid, pred, 0.5)   # log stays finite
            gt = jnp.where(valid, gt, 2.0)       # neither pos nor neg

        is_pos = gt == 1.0
        is_neg = gt < 1.0

        # One log per element; select the argument *before* the log and clamp
        # it so pred at exactly 0 or 1 never produces inf*0 NaNs (intentional
        # deviation from the reference, which returns -inf/NaN there).
        one_m_pred = 1.0 - pred
        log_arg = jnp.where(is_pos, pred, one_m_pred)
        l = jnp.log(jnp.maximum(log_arg, 1e-30))

        one_m_gt = 1.0 - gt
        gt2 = one_m_gt * one_m_gt
        gt4 = gt2 * gt2                           # (1 - gt)^4

        pos_w = one_m_pred * one_m_pred           # (1 - pred)^2
        neg_w = (pred * pred) * gt4               # pred^2 * (1 - gt)^4
        w = jnp.where(is_pos, pos_w, jnp.where(is_neg, neg_w, 0.0))
        elem = l * w                              # pos_loss + neg_loss element
        npos_elem = is_pos.astype(jnp.float32)

        # Per-lane (8,128) partial sums; the reshape keeps the last two dims
        # so it is layout-free. Cross-lane reduction happens in the wrapper.
        loss_ref[...] += elem.reshape(r, SUB, LANE).sum(axis=0)[None]
        npos_ref[...] += npos_elem.reshape(r, SUB, LANE).sum(axis=0)[None]

    return kernel


def focal_loss(pred, gt, *, tile_rows=2048, num_cores=2):
    """Pallas TPU implementation of gknet FocalLoss.forward(out, target).

    Accepts any shape / floating dtype (bf16 pred halves HBM traffic and is
    upcast to f32 in-kernel). Keep gt in f32 so the gt == 1.0 test is exact.
    """
    assert pred.shape == gt.shape
    n = pred.size
    pred_flat = pred.reshape(-1)
    gt_flat = gt.reshape(-1)

    # Lane alignment only. Hits only when numel % 128 != 0 (rare for NCHW
    # heatmaps); pad values are neutral (pred=0.5 -> finite log, gt=2.0 ->
    # neither pos nor neg) so no mask stream is needed for them.
    # TODO(synk): handle the sub-128 tail in-kernel (manual DMA) to avoid the
    # pad copy entirely if unaligned sizes ever matter.
    rem = n % LANE
    if rem:
        pad = LANE - rem
        pred_flat = jnp.pad(pred_flat, (0, pad), constant_values=0.5)
        gt_flat = jnp.pad(gt_flat, (0, pad), constant_values=2.0)
    rows = pred_flat.size // LANE

    pred_2d = pred_flat.reshape(rows, LANE)
    gt_2d = gt_flat.reshape(rows, LANE)

    # Tile sizing: multiple of the sublane count, clamped to the problem size.
    tile_rows = max(SUB, (min(tile_rows, pl.cdiv(rows, SUB) * SUB) // SUB) * SUB)
    total_blocks = pl.cdiv(rows, tile_rows)

    # Core split: v7x has 2 TensorCores; extra "core" iterations are harmless
    # sequential no-ops on 1-TC chips (v5e/v6e). Each core owns a contiguous
    # run of blocks and its own per-lane accumulator block in the output.
    ncores = max(1, min(num_cores, total_blocks))
    steps_per_core = pl.cdiv(total_blocks, ncores)
    need_mask = (ncores * steps_per_core * tile_rows) != rows

    def in_index(c, s):
        # Never hand Pallas an out-of-range block index; duplicated blocks are
        # neutralised by the in-kernel row mask (need_mask is True then).
        blk = jnp.minimum(c * steps_per_core + s, total_blocks - 1)
        return (blk, 0)

    in_spec = pl.BlockSpec((tile_rows, LANE), in_index)
    out_spec = pl.BlockSpec((1, SUB, LANE), lambda c, s: (c, 0, 0))

    kernel = _make_kernel(tile_rows, steps_per_core, rows, need_mask)

    n_main = rows * LANE
    cost = pl.CostEstimate(
        flops=16 * n_main,
        transcendentals=n_main,
        bytes_accessed=n_main * (pred.dtype.itemsize + gt.dtype.itemsize)
        + 2 * ncores * SUB * LANE * 4,
    )

    loss_parts, npos_parts = pl.pallas_call(
        kernel,
        grid=(ncores, steps_per_core),
        in_specs=[in_spec, in_spec],
        out_specs=[out_spec, out_spec],
        out_shape=[jax.ShapeDtypeStruct((ncores, SUB, LANE), jnp.float32)] * 2,
        compiler_params=pltpu.CompilerParams(
            dimension_semantics=("parallel", "arbitrary")),
        cost_estimate=cost,
    )(pred_2d, gt_2d)

    loss_sum = jnp.sum(loss_parts)   # = pos_loss + neg_loss
    num_pos = jnp.sum(npos_parts)
    # Reference: -neg_loss when num_pos == 0 (pos_loss is 0 there anyway),
    # else -(pos_loss + neg_loss) / num_pos.
    return -loss_sum / jnp.maximum(num_pos, 1.0)


def _focal_loss_ref(pred, gt):
    """Pure-JAX reference mirroring the PyTorch _neg_loss exactly."""
    pred = pred.astype(jnp.float32)
    gt = gt.astype(jnp.float32)
    pos_inds = (gt == 1.0).astype(jnp.float32)
    neg_inds = (gt < 1.0).astype(jnp.float32)
    neg_weights = (1.0 - gt) ** 4
    pos_loss = (jnp.log(pred) * (1.0 - pred) ** 2 * pos_inds).sum()
    neg_loss = (jnp.log(1.0 - pred) * pred ** 2 * neg_weights * neg_inds).sum()
    num_pos = pos_inds.sum()
    return jnp.where(num_pos == 0.0,
                     -neg_loss,
                     -(pos_loss + neg_loss) / jnp.maximum(num_pos, 1.0))


if __name__ == "__main__":
    key = jax.random.PRNGKey(0)
    k_pred, k_gt, k_peak, k_pred2 = jax.random.split(key, 4)

    B, C, H, W = 2, 4, 16, 16  # NCHW, matches the module's (batch x c x h x w)

    # pred: heatmap-style predictions in (0, 1) (as after sigmoid).
    pred = jax.nn.sigmoid(jax.random.normal(k_pred, (B, C, H, W), jnp.float32))
    pred = jnp.clip(pred, 1e-4, 1.0 - 1e-4)

    # gt: Gaussian-heatmap-like ground truth in [0, 1) with a few exact 1.0 peaks.
    gt_soft = jax.random.uniform(k_gt, (B, C, H, W), jnp.float32) * 0.9
    peaks = jax.random.uniform(k_peak, (B, C, H, W), jnp.float32) < 0.02
    gt = jnp.where(peaks, 1.0, gt_soft)

    # 1) aligned NCHW heatmap
    loss = focal_loss(pred, gt)
    jax.block_until_ready(loss)
    ref = _focal_loss_ref(pred, gt)
    assert jnp.allclose(loss, ref, rtol=1e-4, atol=1e-5), (loss, ref)

    # 2) no positive peaks -> exercises the num_pos == 0 branch
    loss0 = focal_loss(pred, gt_soft)
    jax.block_until_ready(loss0)
    ref0 = _focal_loss_ref(pred, gt_soft)
    assert jnp.allclose(loss0, ref0, rtol=1e-4, atol=1e-5), (loss0, ref0)

    # 3) bf16 pred streamed natively (gt stays f32)
    loss_bf = focal_loss(pred.astype(jnp.bfloat16), gt)
    jax.block_until_ready(loss_bf)
    ref_bf = _focal_loss_ref(pred.astype(jnp.bfloat16), gt)
    assert jnp.allclose(loss_bf, ref_bf, rtol=1e-4, atol=1e-5), (loss_bf, ref_bf)

    # 4) non-128-aligned size -> lane-pad path
    pred_odd = jnp.clip(pred.reshape(-1)[:1000], 1e-4, 1.0 - 1e-4)
    gt_odd = gt.reshape(-1)[:1000]
    loss_odd = focal_loss(pred_odd, gt_odd)
    jax.block_until_ready(loss_odd)
    ref_odd = _focal_loss_ref(pred_odd, gt_odd)
    assert jnp.allclose(loss_odd, ref_odd, rtol=1e-4, atol=1e-5), (loss_odd, ref_odd)

    # 5) partial last block + 2-"core" split + in-kernel tail mask
    n5 = 20 * LANE
    pred5 = jnp.clip(jax.nn.sigmoid(jax.random.normal(k_pred2, (n5,), jnp.float32)),
                     1e-4, 1.0 - 1e-4)
    gt5_soft = jax.random.uniform(k_gt, (n5,), jnp.float32) * 0.9
    gt5 = jnp.where(jax.random.uniform(k_peak, (n5,), jnp.float32) < 0.02,
                    1.0, gt5_soft)
    loss5 = focal_loss(pred5, gt5, tile_rows=8, num_cores=2)
    jax.block_until_ready(loss5)
    ref5 = _focal_loss_ref(pred5, gt5)
    assert jnp.allclose(loss5, ref5, rtol=1e-4, atol=1e-5), (loss5, ref5)

    print("KERNEL_OK")
</pallas_src>

<mosaic_0001>
module attributes {stable_mosaic.version = 11 : i64} {
  func.func @kernel(%arg0: i32, %arg1: i32, %arg2: memref<16x128xf32, #tpu.memory_space<vmem>>, %arg3: memref<16x128xf32, #tpu.memory_space<vmem>>, %arg4: memref<1x8x128xf32, #tpu.memory_space<vmem>>, %arg5: memref<1x8x128xf32, #tpu.memory_space<vmem>>) attributes {dimension_semantics = [#tpu.dimension_semantics<parallel>, #tpu.dimension_semantics<arbitrary>], iteration_bounds = array<i64: 1, 1>, scalar_prefetch = 0 : i64, scratch_operands = 0 : i64, tpu.core_type = #tpu.core_type<tc>, window_params = [{transform_indices = @transform_0, window_bounds = array<i64: 16, 128>}, {transform_indices = @transform_1, window_bounds = array<i64: 16, 128>}, {transform_indices = @transform_2, window_bounds = array<i64: 1, 8, 128>}, {transform_indices = @transform_3, window_bounds = array<i64: 1, 8, 128>}]} {
    %c0_i32 = arith.constant 0 : i32
    %0 = arith.cmpi eq, %arg1, %c0_i32 : i32
    %1 = arith.extui %0 : i1 to i32
    %c0_i32_0 = arith.constant 0 : i32
    %2 = arith.cmpi ne, %1, %c0_i32_0 : i32
    scf.if %2 {
      %cst_23 = arith.constant 0.000000e+00 : f32
      %40 = vector.broadcast %cst_23 : f32 to vector<1x8x128xf32>
      %c0_24 = arith.constant 0 : index
      %c0_25 = arith.constant 0 : index
      %c0_26 = arith.constant 0 : index
      %41 = vector.load %arg4[%c0_24, %c0_25, %c0_26] : memref<1x8x128xf32, #tpu.memory_space<vmem>>, vector<1x8x128xf32>
      tpu.vector_store %arg4[%c0_24, %c0_25, %c0_26], %40 {strides = array<i32>} : memref<1x8x128xf32, #tpu.memory_space<vmem>>, vector<1x8x128xf32>,
      %cst_27 = arith.constant 0.000000e+00 : f32
      %42 = vector.broadcast %cst_27 : f32 to vector<1x8x128xf32>
      %c0_28 = arith.constant 0 : index
      %c0_29 = arith.constant 0 : index
      %c0_30 = arith.constant 0 : index
      %43 = vector.load %arg5[%c0_28, %c0_29, %c0_30] : memref<1x8x128xf32, #tpu.memory_space<vmem>>, vector<1x8x128xf32>
      tpu.vector_store %arg5[%c0_28, %c0_29, %c0_30], %42 {strides = array<i32>} : memref<1x8x128xf32, #tpu.memory_space<vmem>>, vector<1x8x128xf32>,
    } else {
    }
    %c0 = arith.constant 0 : index
    %c0_1 = arith.constant 0 : index
    %3 = vector.load %arg2[%c0, %c0_1] : memref<16x128xf32, #tpu.memory_space<vmem>>, vector<16x128xf32>
    %c0_2 = arith.constant 0 : index
    %c0_3 = arith.constant 0 : index
    %4 = vector.load %arg3[%c0_2, %c0_3] : memref<16x128xf32, #tpu.memory_space<vmem>>, vector<16x128xf32>
    %cst = arith.constant 1.000000e+00 : f32
    %5 = vector.broadcast %cst : f32 to vector<16x128xf32>
    %6 = arith.cmpf oeq, %4, %5 : vector<16x128xf32>
    %cst_4 = arith.constant 1.000000e+00 : f32
    %7 = vector.broadcast %cst_4 : f32 to vector<16x128xf32>
    %8 = arith.cmpf olt, %4, %7 : vector<16x128xf32>
    %cst_5 = arith.constant 1.000000e+00 : f32
    %9 = vector.broadcast %cst_5 : f32 to vector<16x128xf32>
    %10 = arith.subf %9, %3 : vector<16x128xf32>
    %11 = arith.select %6, %3, %10 : vector<16x128xi1>, vector<16x128xf32>
    %cst_6 = arith.constant 1.000000e-30 : f32
    %12 = vector.broadcast %cst_6 : f32 to vector<16x128xf32>
    %13 = arith.maximumf %11, %12 : vector<16x128xf32>
    %14 = math.log %13 : vector<16x128xf32>
    %cst_7 = arith.constant 1.000000e+00 : f32
    %15 = vector.broadcast %cst_7 : f32 to vector<16x128xf32>
    %16 = arith.subf %15, %4 : vector<16x128xf32>
    %17 = arith.mulf %16, %16 : vector<16x128xf32>
    %18 = arith.mulf %17, %17 : vector<16x128xf32>
    %19 = arith.mulf %10, %10 : vector<16x128xf32>
    %20 = arith.mulf %3, %3 : vector<16x128xf32>
    %21 = arith.mulf %20, %18 : vector<16x128xf32>
    %cst_8 = arith.constant 0.000000e+00 : f32
    %22 = vector.broadcast %cst_8 : f32 to vector<16x128xf32>
    %23 = arith.select %8, %21, %22 : vector<16x128xi1>, vector<16x128xf32>
    %24 = arith.select %6, %19, %23 : vector<16x128xi1>, vector<16x128xf32>
    %25 = arith.mulf %14, %24 : vector<16x128xf32>
    %26 = arith.extui %6 : vector<16x128xi1> to vector<16x128xi32>
    %27 = arith.sitofp %26 : vector<16x128xi32> to vector<16x128xf32>
    %c0_9 = arith.constant 0 : index
    %c0_10 = arith.constant 0 : index
    %c0_11 = arith.constant 0 : index
    %28 = vector.load %arg4[%c0_9, %c0_10, %c0_11] : memref<1x8x128xf32, #tpu.memory_space<vmem>>, vector<1x8x128xf32>
    %29 = vector.shape_cast %25 : vector<16x128xf32> to vector<2x8x128xf32>
    %cst_12 = arith.constant dense<0.000000e+00> : vector<8x128xf32>
    %30 = vector.multi_reduction <add>, %29, %cst_12 [0] : vector<2x8x128xf32> to vector<8x128xf32>
    %31 = vector.shape_cast %30 : vector<8x128xf32> to vector<1x8x128xf32>
    %32 = arith.addf %28, %31 : vector<1x8x128xf32>
    %c0_13 = arith.constant 0 : index
    %c0_14 = arith.constant 0 : index
    %c0_15 = arith.constant 0 : index
    %33 = vector.load %arg4[%c0_13, %c0_14, %c0_15] : memref<1x8x128xf32, #tpu.memory_space<vmem>>, vector<1x8x128xf32>
    tpu.vector_store %arg4[%c0_13, %c0_14, %c0_15], %32 {strides = array<i32>} : memref<1x8x128xf32, #tpu.memory_space<vmem>>, vector<1x8x128xf32>,
    %c0_16 = arith.constant 0 : index
    %c0_17 = arith.constant 0 : index
    %c0_18 = arith.constant 0 : index
    %34 = vector.load %arg5[%c0_16, %c0_17, %c0_18] : memref<1x8x128xf32, #tpu.memory_space<vmem>>, vector<1x8x128xf32>
    %35 = vector.shape_cast %27 : vector<16x128xf32> to vector<2x8x128xf32>
    %cst_19 = arith.constant dense<0.000000e+00> : vector<8x128xf32>
    %36 = vector.multi_reduction <add>, %35, %cst_19 [0] : vector<2x8x128xf32> to vector<8x128xf32>
    %37 = vector.shape_cast %36 : vector<8x128xf32> to vector<1x8x128xf32>
    %38 = arith.addf %34, %37 : vector<1x8x128xf32>
    %c0_20 = arith.constant 0 : index
    %c0_21 = arith.constant 0 : index
    %c0_22 = arith.constant 0 : index
    %39 = vector.load %arg5[%c0_20, %c0_21, %c0_22] : memref<1x8x128xf32, #tpu.memory_space<vmem>>, vector<1x8x128xf32>
    tpu.vector_store %arg5[%c0_20, %c0_21, %c0_22], %38 {strides = array<i32>} : memref<1x8x128xf32, #tpu.memory_space<vmem>>, vector<1x8x128xf32>,
    return
  }
  func.func @transform_0(%arg0: i32, %arg1: i32) -> (i32, i32) {
    %c1_i32 = arith.constant 1 : i32
    %0 = arith.muli %arg0, %c1_i32 : i32
    %1 = arith.addi %0, %arg1 : i32
    %c0_i32 = arith.constant 0 : i32
    %2 = arith.minsi %1, %c0_i32 : i32
    %c0_i32_0 = arith.constant 0 : i32
    %c0_i32_1 = arith.constant 0 : i32
    return %2, %c0_i32_0 : i32, i32
  }
  func.func @transform_1(%arg0: i32, %arg1: i32) -> (i32, i32) {
    %c1_i32 = arith.constant 1 : i32
    %0 = arith.muli %arg0, %c1_i32 : i32
    %1 = arith.addi %0, %arg1 : i32
    %c0_i32 = arith.constant 0 : i32
    %2 = arith.minsi %1, %c0_i32 : i32
    %c0_i32_0 = arith.constant 0 : i32
    %c0_i32_1 = arith.constant 0 : i32
    return %2, %c0_i32_0 : i32, i32
  }
  func.func @transform_2(%arg0: i32, %arg1: i32) -> (i32, i32, i32) {
    %c0_i32 = arith.constant 0 : i32
    %c0_i32_0 = arith.constant 0 : i32
    %c0_i32_1 = arith.constant 0 : i32
    return %arg0, %c0_i32, %c0_i32_0 : i32, i32, i32
  }
  func.func @transform_3(%arg0: i32, %arg1: i32) -> (i32, i32, i32) {
    %c0_i32 = arith.constant 0 : i32
    %c0_i32_0 = arith.constant 0 : i32
    %c0_i32_1 = arith.constant 0 : i32
    return %arg0, %c0_i32, %c0_i32_0 : i32, i32, i32
  }
}

</mosaic_0001>

<bundles_post_ra>
// kernel: tpu_custom_call.1
= control target key start
LH: loop header
LB: loop body
LE: loop exit
PB: predicated region body
PF: predicated region fallthrough
CT: control target
= control target key end

     0   :  { %9 = vsyncpa [#allocation3], 0  ;;  %s343_s0 = inlined_call_operand.hbm [shape: f32[16,128], index: 0, kind: input, shape index: {}]   ;;  %s344_s1 = inlined_call_operand.hbm [shape: f32[16,128], index: 1, kind: input, shape index: {}]   ;;  %s345_s2 = inlined_call_operand.hbm [shape: f32[1,8,128], index: 2, kind: output, shape index: {0}]   ;;  %s346_s3 = inlined_call_operand.hbm [shape: f32[1,8,128], index: 3, kind: output, shape index: {1}]  }
   0x1   :  { %10 = vsyncpa [#allocation6], 0 }
   0x2   :  { %11 = vsyncpa [#allocation4], 0 }
   0x3   :  { %12 = vsyncpa [#allocation9], 0  ;;  %s260_s12 = smov [#allocation2]   ;;  %s164_s16 = scalar_lea.hbm %s343_s0, 256 }
   0x4   :  { %s24_s13 = sshll.u32 %s260_s12, 4  ;;  %p165_p0 = scmp.ne.s32.totalorder %s343_s0, %s164_s16  ;;  %s25_s13 = int_to_ptr.vmem [resolvable:$true] %s24_s13 }
   0x5   :  { %p168_p1 = scmp.lt.u32.totalorder %s164_s16, %s343_s0 }
   0x7   :  { %p170_p2 = pnand %p168_p1, %p165_p0 }
   0x9   :  { %173 = shalt.err (!%p170_p2)
}
   0xa   :  { %s174_s21 = scalar_lea.vmem %s25_s13, 256  ;;  %p179_p4 = scmp.lt.s32.totalorder %s25_s13, %s25_s13 }
   0xb   :  { %p175_p3 = scmp.ne.s32.totalorder %s25_s13, %s174_s21  ;;  %p180_p5 = scmp.lt.s32.totalorder %s174_s21, %s174_s21 }
   0xd   :  { %p181_p6 = por %p180_p5, %p179_p4 }
   0xf   :  { %p182_p7 = pnand %p181_p6, %p175_p3 }
  0x11   :  { %185 = shalt.err (!%p182_p7)
}
  0x12   :  { %s261_s22 = smov 128   ;;  %s262_s23 = smov 8  }
  0x13   :  { %30 = dma.hbm_to_vmem [thread:$0]  %s343_s0, 256, %s25_s13, [#allocation3], %s261_s22, %s261_s22, %s262_s23  }
  0x14   :  { %s263_s26 = smov [#allocation5]   ;;  %s186_s30 = scalar_lea.hbm %s344_s1, 256 }
  0x15   :  { %s42_s27 = sshll.u32 %s263_s26, 4  ;;  %p187_p8 = scmp.ne.s32.totalorder %s344_s1, %s186_s30  ;;  %s43_s27 = int_to_ptr.vmem [resolvable:$true] %s42_s27 }
  0x16   :  { %p190_p9 = scmp.lt.u32.totalorder %s186_s30, %s344_s1 }
  0x18   :  { %p192_p10 = pnand %p190_p9, %p187_p8 }
  0x1a   :  { %195 = shalt.err (!%p192_p10)
}
  0x1b   :  { %s196_s8 = scalar_lea.vmem %s43_s27, 256  ;;  %p201_p12 = scmp.lt.s32.totalorder %s43_s27, %s43_s27 }
  0x1c   :  { %p197_p11 = scmp.ne.s32.totalorder %s43_s27, %s196_s8  ;;  %p202_p13 = scmp.lt.s32.totalorder %s196_s8, %s196_s8 }
  0x1e   :  { %p203_p0 = por %p202_p13, %p201_p12 }
  0x20   :  { %p204_p1 = pnand %p203_p0, %p197_p11 }
  0x22   :  { %207 = shalt.err (!%p204_p1)
}
  0x23   :  { %48 = dma.hbm_to_vmem [thread:$0]  %s344_s1, 256, %s43_s27, [#allocation6], %s261_s22, %s261_s22, %s262_s23  }
  0x24   :  { %252 = dma.done.wait [#allocation3], 256  }
  0x25   :  { %253 = vsyncadd [#allocation3], 4294967040 }
  0x26   :  { %254 = dma.done.wait [#allocation6], 256  }
  0x27   :  { %255 = vsyncadd [#allocation6], 4294967040  ;;  %v69_v0 = vld [vmem:[#allocation2] sm:$0xff]  ;;  %v70_v1 = vld [vmem:[#allocation2 + $0x8] sm:$0xff]  ;;  %v264_v16 = vmov 0.0   ;;  %s265_s1 = smov [#allocation8]  }
  0x28   :  { %v71_v2 = vld [vmem:[#allocation5] sm:$0xff]  ;;  %v72_v3 = vld [vmem:[#allocation5 + $0x8] sm:$0xff]  ;;  %v77_v4 = vsub.f32 1.0, %v69_v0  ;;  %v78_v5 = vsub.f32 1.0, %v70_v1  ;;  %v95_v14 = vmul.f32 %v69_v0, %v69_v0  ;;  %v96_v15 = vmul.f32 %v70_v1, %v70_v1  ;;  %s133_s10 = sshll.u32 %s265_s1, 4  ;;  %s134_s10 = int_to_ptr.vmem [resolvable:$true] %s133_s10 }
  0x29   :  { %vm73_vm0 = vcmp.eq.f32.partialorder %v71_v2, 1.0  ;;  %vm74_vm1 = vcmp.eq.f32.partialorder %v72_v3, 1.0  ;;  %v87_v6 = vsub.f32 1.0, %v71_v2  ;;  %v88_v7 = vsub.f32 1.0, %v72_v3  ;;  %s208_s11 = scalar_lea.vmem %s134_s10, 128  ;;  %p213_p3 = scmp.lt.s32.totalorder %s134_s10, %s134_s10 }
  0x2a   :  { %v79_v8 = vsel %vm73_vm0, %v69_v0, %v77_v4  ;;  %v80_v9 = vsel %vm74_vm1, %v70_v1, %v78_v5  ;;  %v151_v17 = vsel %vm73_vm0, 1.0, %v264_v16  ;;  %v152_v18 = vsel %vm74_vm1, 1.0, %v264_v16  ;;  %p209_p2 = scmp.ne.s32.totalorder %s134_s10, %s208_s11  ;;  %p214_p4 = scmp.lt.s32.totalorder %s208_s11, %s208_s11 }
  0x2b   :  { %v81_v10 = vmax.f32 %v79_v8, 1e-30  ;;  %v82_v11 = vmax.f32 %v80_v9, 1e-30  ;;  %v89_v12 = vmul.f32 %v87_v6, %v87_v6  ;;  %v90_v13 = vmul.f32 %v88_v7, %v88_v7 }
  0x2c   :  { %v114_v21 = vadd.f32 %v152_v18, %v151_v17  ;;  %vm75_vm2 = vcmp.lt.f32.partialorder %v71_v2, 1.0  ;;  %vm76_vm3 = vcmp.lt.f32.partialorder %v72_v3, 1.0  ;;  %p215_p5 = por %p214_p4, %p213_p3 }
  0x2d   :  { %160 = vlog2.f32 %v81_v10  ;;  %v91_v19 = vmul.f32 %v89_v12, %v89_v12  ;;  %v92_v20 = vmul.f32 %v90_v13, %v90_v13 }
  0x2e   :  { %162 = vlog2.f32 %v82_v11  ;;  %116 = vst [vmem:[#allocation8] sm:$0xff] %v114_v21  ;;  %p216_p6 = pnand %p215_p5, %p209_p2 }
  0x2f   :  { %v97_v22 = vmul.f32 %v95_v14, %v91_v19  ;;  %v98_v23 = vmul.f32 %v96_v15, %v92_v20 }
  0x30   :  { %219 = shalt.err (!%p216_p6)
}
  0x31   :  { %s220_s14 = scalar_lea.hbm %s346_s3, 128 }
  0x32   :  { %p221_p7 = scmp.ne.s32.totalorder %s346_s3, %s220_s14  ;;  %p224_p8 = scmp.lt.u32.totalorder %s220_s14, %s346_s3 }
  0x34   :  { %p226_p9 = pnand %p224_p8, %p221_p7 }
  0x36   :  { %229 = shalt.err (!%p226_p9)
}
  0x37   :  { %136 = dma.vmem_to_hbm [thread:$0]  %s134_s10, 128, %s346_s3, [#allocation9]   ;;  %v93_v24 = vmul.f32 %v77_v4, %v77_v4  ;;  %v94_v25 = vmul.f32 %v78_v5, %v78_v5  ;;  %v99_v26 = vsel %vm75_vm2, %v97_v22, 0.0  ;;  %v100_v27 = vsel %vm76_vm3, %v98_v23, 0.0  ;;  %v161_v28 = vpop.eup %160 }
  0x38   :  { %v163_v30 = vpop.eup %162  ;;  %v84_v31 = vmul.f32 0.6931472, %v161_v28  ;;  %s266_s21 = smov [#allocation7]  }
  0x39   :  { %v101_v29 = vsel %vm73_vm0, %v93_v24, %v99_v26  ;;  %v102_v32 = vsel %vm74_vm1, %v94_v25, %v100_v27  ;;  %v86_v33 = vmul.f32 0.6931472, %v163_v30  ;;  %s123_s22 = sshll.u32 %s266_s21, 4  ;;  %s124_s22 = int_to_ptr.vmem [resolvable:$true] %s123_s22 }
  0x3a   :  { %v103_v34 = vmul.f32 %v101_v29, %v84_v31  ;;  %s230_s3 = scalar_lea.vmem %s124_s22, 128  ;;  %p235_p11 = scmp.lt.s32.totalorder %s124_s22, %s124_s22 }
  0x3b   :  { %v104_v35 = vmul.f32 %v102_v32, %v86_v33  ;;  %p231_p10 = scmp.ne.s32.totalorder %s124_s22, %s230_s3  ;;  %p236_p12 = scmp.lt.s32.totalorder %s230_s3, %s230_s3 }
  0x3d   :  { %v110_v36 = vadd.f32 %v104_v35, %v103_v34  ;;  %p237_p13 = por %p236_p12, %p235_p11 }
  0x3f   :  { %112 = vst [vmem:[#allocation7] sm:$0xff] %v110_v36  ;;  %p238_p0 = pnand %p237_p13, %p231_p10 }
  0x41   :  { %241 = shalt.err (!%p238_p0)
}
  0x42   :  { %s242_s25 = scalar_lea.hbm %s345_s2, 128 }
  0x43   :  { %p243_p1 = scmp.ne.s32.totalorder %s345_s2, %s242_s25  ;;  %p246_p2 = scmp.lt.u32.totalorder %s242_s25, %s345_s2 }
  0x45   :  { %p248_p3 = pnand %p246_p2, %p243_p1 }
  0x47   :  { %251 = shalt.err (!%p248_p3)
}
  0x48   :  { %126 = dma.vmem_to_hbm [thread:$0]  %s124_s22, 128, %s345_s2, [#allocation4]  }
  0x49   :  { %256 = dma.done.wait [#allocation4], 128  }
  0x4a   :  { %257 = vsyncadd [#allocation4], 4294967168 }
  0x4b   :  { %258 = dma.done.wait [#allocation9], 128  }
  0x4c   :  { %259 = vsyncadd [#allocation9], 4294967168 }
  0x4d   :  { %143 = vsyncpa [#allocation3], 1 }
  0x4e   :  { %144 = vsyncpa [#allocation6], 1 }
  0x4f   :  { %145 = vsyncpa [#allocation4], 1 }
  0x50   :  { %146 = vsyncpa [#allocation9], 1 }

</bundles_post_ra>
